<compile_context>
chip_gen: v5e
topology: v5e:2x2
jax: 0.10.0
libtpu: 0.0.40
codegen_flags: <defaults>
</compile_context>

<pallas_src>
import jax
import jax.numpy as jnp
from jax import lax
from jax.experimental import pallas as pl
from jax.experimental.pallas import tpu as pltpu


def cal_conv_feature(L_in, kernel_size, stride, padding):
    return (L_in - kernel_size + 2 * padding) // stride + 1


def _round_up(x, m):
    return ((x + m - 1) // m) * m


# ----------------------------- Pallas forward ---------------------------------
def encoder_forward_pallas(x, weight, gamma, beta, running_mean, running_var,
                           *, stride=1, padding=0, eps=1e-5, m_tile=512):
    """x: (B, C_in, L_in) f32, weight: (C_out, C_in, K) f32 (PyTorch layouts)."""
    B, C_in, L_in = x.shape
    C_out, C_in_w, K = weight.shape
    assert C_in_w == C_in, (C_in_w, C_in)
    L_out = cal_conv_feature(L_in, K, stride, padding)
    assert L_out >= 1, "invalid conv geometry"

    # ---------------- host-side layout plumbing (im2col, once per call) ---------
    # Zero-pad length (Conv1d padding), channels-last, then gather the K taps into
    # the contraction dim: cols[b, l, k, c] = x_pad[b, c, l*stride + k].
    x_pad = jnp.pad(x, ((0, 0), (0, 0), (padding, padding)))          # (B, C_in, L_pad)
    xt = jnp.transpose(x_pad, (0, 2, 1))                              # (B, L_pad, C_in)
    taps = [xt[:, k:k + stride * (L_out - 1) + 1:stride, :] for k in range(K)]
    cols = jnp.stack(taps, axis=2)                                    # (B, L_out, K, C_in)

    Kc = K * C_in
    cols2d = cols.reshape(B * L_out, Kc)                              # (M, Kc)

    # Pad contraction to a sublane multiple and output channels lane-dense (128).
    Kc_pad = _round_up(Kc, 8)
    C_out_pad = _round_up(C_out, 128)

    # M tiling: sublane-aligned, capped for VMEM, and >= 2 grid programs when possible
    # so both v7x TensorCores get work.
    M = B * L_out
    TM = min(m_tile, max(8, _round_up(pl.cdiv(M, 2), 8)))
    M_pad = _round_up(M, TM)

    cols2d = jnp.pad(cols2d, ((0, M_pad - M), (0, Kc_pad - Kc)))

    # Weights: (C_out, C_in, K) -> (K, C_in, C_out) -> (K*C_in, C_out), then pad.
    w2 = jnp.transpose(weight, (2, 1, 0)).reshape(Kc, C_out)
    w2 = jnp.pad(w2, ((0, Kc_pad - Kc), (0, C_out_pad - C_out)))

    # Fold eval-mode BatchNorm1d into a single per-channel affine (scale, shift).
    scale = gamma / jnp.sqrt(running_var + eps)
    shift = beta - running_mean * scale
    bn_scale = jnp.pad(scale.reshape(1, C_out), ((0, 0), (0, C_out_pad - C_out)))
    bn_shift = jnp.pad(shift.reshape(1, C_out), ((0, 0), (0, C_out_pad - C_out)))

    def kernel(x_ref, w_ref, s_ref, b_ref, o_ref):
        # One lane/sublane-dense MXU matmul per grid step + fused BN/ReLU epilogue.
        acc = jnp.dot(x_ref[...], w_ref[...], preferred_element_type=jnp.float32)
        o_ref[...] = jnp.maximum(acc * s_ref[...] + b_ref[...], 0.0).astype(o_ref.dtype)

    # Explicit VMEM budget: actual block bytes (x, w, scale, shift, out) with headroom
    # for double buffering; clamped to stay under v7x's 64 MiB physical VMEM.
    block_bytes = 4 * (TM * Kc_pad + Kc_pad * C_out_pad + 2 * C_out_pad + TM * C_out_pad)
    vmem_limit = int(min(max(4 * block_bytes, 8 << 20), 64 << 20))

    out2d = pl.pallas_call(
        kernel,
        out_shape=jax.ShapeDtypeStruct((M_pad, C_out_pad), jnp.float32),
        grid=(M_pad // TM,),
        in_specs=[
            pl.BlockSpec((TM, Kc_pad), lambda i: (i, 0)),
            pl.BlockSpec((Kc_pad, C_out_pad), lambda i: (0, 0)),
            pl.BlockSpec((1, C_out_pad), lambda i: (0, 0)),
            pl.BlockSpec((1, C_out_pad), lambda i: (0, 0)),
        ],
        out_specs=pl.BlockSpec((TM, C_out_pad), lambda i: (i, 0)),
        compiler_params=pltpu.CompilerParams(
            dimension_semantics=("parallel",),
            vmem_limit_bytes=vmem_limit),
    )(cols2d, w2, bn_scale, bn_shift)

    # Drop M / channel padding, back to PyTorch NCW layout.
    out = out2d[:M, :C_out].reshape(B, L_out, C_out)
    return jnp.transpose(out, (0, 2, 1))


# ----------------------------- pure-JAX reference ------------------------------
def encoder_forward_ref(x, weight, gamma, beta, running_mean, running_var,
                        *, stride=1, padding=0, eps=1e-5):
    dn = ("NCH", "OIH", "NCH")
    y = lax.conv_general_dilated(x, weight, window_strides=(stride,),
                                 padding=[(padding, padding)], dimension_numbers=dn)
    scale = gamma / jnp.sqrt(running_var + eps)
    shift = beta - running_mean * scale
    y = y * scale[None, :, None] + shift[None, :, None]
    return jnp.maximum(y, 0.0)


# ----------------------------- main --------------------------------------------
if __name__ == "__main__":
    key = jax.random.PRNGKey(0)
    configs = [
        dict(batch=2, inplanes=4, planes=32, data_len=16, kernel_size=3, stride=1, padding=1),
        dict(batch=2, inplanes=8, planes=16, data_len=32, kernel_size=5, stride=2, padding=2),
    ]
    for cfg in configs:
        key, kx, kw, kg, kb, km, kv = jax.random.split(key, 7)
        B, Cin, Cout = cfg["batch"], cfg["inplanes"], cfg["planes"]
        L, K, S, P = cfg["data_len"], cfg["kernel_size"], cfg["stride"], cfg["padding"]

        x = jax.random.normal(kx, (B, Cin, L), jnp.float32)
        w = (1.0 / jnp.sqrt(Cin * K)) * jax.random.normal(kw, (Cout, Cin, K), jnp.float32)
        gamma = 1.0 + 0.1 * jax.random.normal(kg, (Cout,), jnp.float32)
        beta = 0.1 * jax.random.normal(kb, (Cout,), jnp.float32)
        rmean = 0.1 * jax.random.normal(km, (Cout,), jnp.float32)
        rvar = jnp.abs(1.0 + 0.1 * jax.random.normal(kv, (Cout,), jnp.float32))

        y = jax.block_until_ready(
            encoder_forward_pallas(x, w, gamma, beta, rmean, rvar, stride=S, padding=P))
        y_ref = jax.block_until_ready(
            encoder_forward_ref(x, w, gamma, beta, rmean, rvar, stride=S, padding=P))

        L_out = cal_conv_feature(L, K, S, P)
        assert y.shape == (B, Cout, L_out), y.shape
        err = float(jnp.max(jnp.abs(y - y_ref)))
        if err > 2e-2:
            raise RuntimeError(f"Pallas output mismatch vs JAX reference: max|diff|={err} cfg={cfg}")
    print("KERNEL_OK")
</pallas_src>

<mosaic_0001>
module attributes {stable_mosaic.version = 11 : i64} {
  func.func @kernel(%arg0: i32, %arg1: memref<16x16xf32, #tpu.memory_space<vmem>>, %arg2: memref<16x128xf32, #tpu.memory_space<vmem>>, %arg3: memref<1x128xf32, #tpu.memory_space<vmem>>, %arg4: memref<1x128xf32, #tpu.memory_space<vmem>>, %arg5: memref<16x128xf32, #tpu.memory_space<vmem>>) attributes {dimension_semantics = [#tpu.dimension_semantics<parallel>], iteration_bounds = array<i64: 2>, scalar_prefetch = 0 : i64, scratch_operands = 0 : i64, tpu.core_type = #tpu.core_type<tc>, window_params = [{transform_indices = @transform_0, window_bounds = array<i64: 16, 16>}, {pipeline_mode = #tpu.pipeline_mode<synchronous>, transform_indices = @transform_1, window_bounds = array<i64: 16, 128>}, {pipeline_mode = #tpu.pipeline_mode<synchronous>, transform_indices = @transform_2, window_bounds = array<i64: 1, 128>}, {pipeline_mode = #tpu.pipeline_mode<synchronous>, transform_indices = @transform_3, window_bounds = array<i64: 1, 128>}, {transform_indices = @transform_4, window_bounds = array<i64: 16, 128>}]} {
    %c0 = arith.constant 0 : index
    %c0_0 = arith.constant 0 : index
    %0 = vector.load %arg1[%c0, %c0_0] : memref<16x16xf32, #tpu.memory_space<vmem>>, vector<16x16xf32>
    %c0_1 = arith.constant 0 : index
    %c0_2 = arith.constant 0 : index
    %1 = vector.load %arg2[%c0_1, %c0_2] : memref<16x128xf32, #tpu.memory_space<vmem>>, vector<16x128xf32>
    %cst = arith.constant dense<0.000000e+00> : vector<16x128xf32>
    %2 = tpu.matmul %0, %1, %cst {dimension_numbers = #tpu.dot_dimension_numbers<[1], [0], [0], [1], [0, 0, 1, 1], [], []>} : vector<16x16xf32>, vector<16x128xf32>, vector<16x128xf32> -> vector<16x128xf32>
    %c0_3 = arith.constant 0 : index
    %c0_4 = arith.constant 0 : index
    %3 = vector.load %arg3[%c0_3, %c0_4] : memref<1x128xf32, #tpu.memory_space<vmem>>, vector<1x128xf32>
    %4 = vector.broadcast %3 : vector<1x128xf32> to vector<16x128xf32>
    %5 = arith.mulf %2, %4 : vector<16x128xf32>
    %c0_5 = arith.constant 0 : index
    %c0_6 = arith.constant 0 : index
    %6 = vector.load %arg4[%c0_5, %c0_6] : memref<1x128xf32, #tpu.memory_space<vmem>>, vector<1x128xf32>
    %7 = vector.broadcast %6 : vector<1x128xf32> to vector<16x128xf32>
    %8 = arith.addf %5, %7 : vector<16x128xf32>
    %cst_7 = arith.constant 0.000000e+00 : f32
    %9 = vector.broadcast %cst_7 : f32 to vector<16x128xf32>
    %10 = arith.maximumf %8, %9 : vector<16x128xf32>
    %c0_8 = arith.constant 0 : index
    %c0_9 = arith.constant 0 : index
    %11 = vector.load %arg5[%c0_8, %c0_9] : memref<16x128xf32, #tpu.memory_space<vmem>>, vector<16x128xf32>
    tpu.vector_store %arg5[%c0_8, %c0_9], %10 {strides = array<i32>} : memref<16x128xf32, #tpu.memory_space<vmem>>, vector<16x128xf32>,
    return
  }
  func.func @transform_0(%arg0: i32) -> (i32, i32) {
    %c0_i32 = arith.constant 0 : i32
    %c0_i32_0 = arith.constant 0 : i32
    return %arg0, %c0_i32 : i32, i32
  }
  func.func @transform_1(%arg0: i32) -> (i32, i32) {
    %c0_i32 = arith.constant 0 : i32
    %c0_i32_0 = arith.constant 0 : i32
    %c0_i32_1 = arith.constant 0 : i32
    return %c0_i32, %c0_i32_0 : i32, i32
  }
  func.func @transform_2(%arg0: i32) -> (i32, i32) {
    %c0_i32 = arith.constant 0 : i32
    %c0_i32_0 = arith.constant 0 : i32
    %c0_i32_1 = arith.constant 0 : i32
    return %c0_i32, %c0_i32_0 : i32, i32
  }
  func.func @transform_3(%arg0: i32) -> (i32, i32) {
    %c0_i32 = arith.constant 0 : i32
    %c0_i32_0 = arith.constant 0 : i32
    %c0_i32_1 = arith.constant 0 : i32
    return %c0_i32, %c0_i32_0 : i32, i32
  }
  func.func @transform_4(%arg0: i32) -> (i32, i32) {
    %c0_i32 = arith.constant 0 : i32
    %c0_i32_0 = arith.constant 0 : i32
    return %arg0, %c0_i32 : i32, i32
  }
}

</mosaic_0001>

<bundles_post_ra>
// kernel: tpu_custom_call.1
= control target key start
LH: loop header
LB: loop body
LE: loop exit
PB: predicated region body
PF: predicated region fallthrough
CT: control target
= control target key end

     0   :  { %9 = vsyncpa [#allocation3], 0  ;;  %s574_s0 = inlined_call_operand.vmem [shape: f32[32,16], index: 0, kind: input, shape index: {}]   ;;  %s575_s1 = inlined_call_operand.vmem [shape: f32[16,128], index: 1, kind: input, shape index: {}]   ;;  %s576_s2 = inlined_call_operand.vmem [shape: f32[1,128], index: 2, kind: input, shape index: {}]   ;;  %s577_s3 = inlined_call_operand.vmem [shape: f32[1,128], index: 3, kind: input, shape index: {}]   ;;  %s578_s4 = inlined_call_operand.hbm [shape: f32[32,128], index: 4, kind: output, shape index: {}]  }
   0x1   :  { %11 = vsyncpa [#allocation3 + $0x1], 0  ;;  %s478_s15 = smov 0   ;;  %s480_s16 = smov 0  }
   0x2   :  { %s482_s17 = smov 0   ;;  %s484_s18 = smov 0  }
   0x3 LB: > { %s499_s19 = sadd.s32 4294967295, %s449_s18   ;;  %s327_s20 = sadd.s32 4294967294, %s449_s18   ;;  %s449_s18 = sphi %s484_s18, %s584_s18   ;;  %s445_s17 = sphi %s482_s17, %s583_s17   ;;  %s441_s16 = sphi %s480_s16, %s582_s16   ;;  %s437_s15 = sphi %s478_s15, %s581_s15  }
   0x4   : > { %s503_s21 = sadd.s32 1, %s449_s18   ;;  %s113_s22 = sadd.s32 1, %s445_s17 }
   0x5   : > { %s110_s23 = ssub.s32 %s449_s18, %s503_s21  ;;  %p123_p0 = scmp.ne.s32.totalorder %s445_s17, %s441_s16 }
   0x6   : > { %p111_p1 = scmp.eq.s32.totalorder %s110_s23, 0  ;;  %p124_p2 = scmp.eq.s32.totalorder %s499_s19, 1 }
   0x7   : > { %p129_p3 = scmp.ne.s32.totalorder %s441_s16, %s437_s15  ;;  %p130_p4 = scmp.eq.s32.totalorder %s327_s20, 1 }
   0x8   : > { %s514_s24 = scalar_select %p111_p1, %s445_s17, %s113_s22  }
   0x9   : > { %p516_p5 = por %p124_p2, %p123_p0  ;;  %p520_p6 = por %p130_p4, %p129_p3 }
   0xa   : > { %p330_p7 = scmp.ge.s32.totalorder %s449_s18, 1  ;;  %p166_p8 = scmp.lt.s32.totalorder %s449_s18, 3 }
   0xc   : > { %p167_p9 = pnand %p330_p7, %p166_p8 }
   0xd   : > { %s332_s5 = sshll.u32 (!%p167_p9), %s499_s19, 1  ;;  %s189_s10 = sand.u32 (!%p167_p9), 1, %s441_s16  }
   0xe   : > { %170 = sbr.rel (%p167_p9) target bundleno = 160 (0xa0), region = 36  ;;  %p193_p10 = scmp.lt.s32.totalorder (!%p167_p9), %s332_s5, 3 }
   0xf   : > { %s331_s11 = sshll.u32 (!%p167_p9), %s189_s10, 4  ;;  %s341_s14 = sshll.u32 (!%p167_p9), %s499_s19, 4 }
  0x10   : > { %s261_s28 = scalar_lea.hbm (!%p167_p9), %s578_s4, %s341_s14  ;;  %s191_s29 = scalar_lea.vmem (!%p167_p9), [#allocation2], %s331_s11 }
  0x11   : > { %s262_s30 = sshll.u32 (!%p167_p9), %s191_s29, 4  ;;  %s250_s19 = scalar_lea.sflag (!%p167_p9), [#allocation3], %s189_s10  ;;  %s263_s30 = int_to_ptr.vmem [resolvable:$true] %s262_s30 }
  0x12   : > { %s407_s11 = scalar_lea.hbm (!%p167_p9), %s578_s4, 32 }
  0x13   : > { %v202_v0 = vld [vmem:[%s575_s1 + $0x8] sm:$0xff]  ;;  %v201_v1 = vld [vmem:[%s575_s1] sm:$0xff]  ;;  %s586_s5 = smov (!%p193_p10, %s332_s5), 3  ;;  %vm203_vm0 = vcmask 130048  }
  0x14   : > { %224 = vmatpush.msra.mxu0 %v202_v0  ;;  %342 = vmatpush.msra.mxu1 %v202_v0  ;;  %s333_s6 = sshll.u32 %s586_s5, 3  ;;  %v385_v4 = vld [vmem:[%s576_s2] ss:$0 sm:$0xff]  ;;  %s264_s5 = sshll.u32 %s261_s28, 4  ;;  %s265_s5 = int_to_ptr.hbm [resolvable:$true] %s264_s5 }
  0x15   : > { %s196_s9 = scalar_lea.vmem %s574_s0, %s333_s6  ;;  %v386_v5 = vld [vmem:[%s577_s3] ss:$0 sm:$0xff]  ;;  %s401_s6 = sshra.s32 %s265_s5, 4  ;;  %s402_s6 = int_to_ptr.hbm [resolvable:$true] %s401_s6 }
  0x16   : > { %225 = vmatpush.msra.mxu0 %v201_v1  ;;  %343 = vmatpush.msra.mxu1 %v201_v1  ;;  %v199_v2 = vld [vmem:[%s196_s9] sm:$0xff]  ;;  %v200_v3 = vld [vmem:[%s196_s9 + $0x8] sm:$0xff]  ;;  %s403_s7 = scalar_lea.hbm %s402_s6, 16  ;;  %p408_p0 = scmp.lt.s32.totalorder %s402_s6, %s578_s4 }
  0x17   : > { %334 = vmatmul.msk.f32.vlgmr.msra.gmra.mxu0 %vm203_vm0, %v199_v2  ;;  %335 = vmatmul.msk.f32.vlgmr.msra.gmra.mxu1 %vm203_vm0, %v200_v3  ;;  %p404_p11 = scmp.ne.s32.totalorder %s402_s6, %s403_s7  ;;  %p409_p1 = scmp.lt.s32.totalorder %s407_s11, %s403_s7 }
  0x19   : > { %p405_p12 = pnand %p404_p11, %p516_p5  ;;  %p410_p2 = por %p409_p1, %p408_p0 }
  0x1b   : > { %p406_p13 = pneg %p405_p12 }
  0x1d   : > { %p411_p3 = pnand %p410_p2, %p406_p13 }
  0x94   : > { %v227_v6 = vpop.f32.mrf.mxu0  ;;  %v230_v7 = vpop.f32.mrf.mxu1 }
  0x95   : > { %v237_v8 = vmul.f32 %v385_v4, %v227_v6  ;;  %v238_v9 = vmul.f32 %v385_v4, %v230_v7 }
  0x97   : > { %v243_v10 = vadd.f32 %v386_v5, %v237_v8  ;;  %v244_v11 = vadd.f32 %v386_v5, %v238_v9 }
  0x99   : > { %v245_v12 = vmax.f32 %v243_v10, 0.0  ;;  %v246_v13 = vmax.f32 %v244_v11, 0.0 }
  0x9b   : > { %247 = vst [vmem:[%s191_s29] sm:$0xff] %v245_v12 }
  0x9c   : > { %248 = vst [vmem:[%s191_s29 + $0x8] sm:$0xff] %v246_v13 }
  0x9d   : > { %414 = shalt.err (!%p411_p3)
}
  0x9e   : > { %s451_s10 = smov 128   ;;  %s452_s14 = smov 8  }
  0x9f   : > { %344 = dma.vmem_to_hbm [thread:$0]  (%p516_p5), %s263_s30, 256, %s265_s5, %s250_s19, %s451_s10, %s451_s10, %s452_s14  }
  0xa0 PF: > { %p350_p4 = scmp.ge.s32.totalorder %s449_s18, 2  ;;  %s279_s20 = sand.u32 1, %s437_s15  }
  0xa1   : > { %s280_s22 = scalar_lea.sflag [#allocation3], %s279_s20 }
  0xa2   : > { %p347_p7 = pnand %p350_p4, %p520_p6 }
  0xa4   : > { %p348_p8 = pneg %p347_p7 }
  0xa6   : > { %432 = dma.done.wait (%p348_p8), %s280_s22, 256  }
  0xa7   : > { %434 = vsyncadd (%p348_p8), %s280_s22, 4294967040  ;;  %p14_p9 = scmp.ge.s32.totalorder %s503_s21, 4   ;;  %s581_s15 = smov %s441_s16 }
  0xa8   : > { %s582_s16 = smov %s445_s17  ;;  %s583_s17 = smov %s514_s24 }
  0xa9   : > { %s584_s18 = smov %s503_s21  ;;  %16 = sbr.rel (!%p14_p9) target bundleno = 3 (0x3), region = 71 }
  0xae   :  { %286 = vsyncpa [#allocation3], 1 }
  0xaf   :  { %288 = vsyncpa [#allocation3 + $0x1], 1 }

</bundles_post_ra>
